<compile_context>
chip_gen: v6e
topology: v6e:2x2x1
jax: 0.10.0
libtpu: 0.0.40
codegen_flags: <defaults>
</compile_context>

<pallas_src>
import functools

import jax
import jax.numpy as jnp
from jax.experimental import pallas as pl
from jax.experimental.pallas import tpu as pltpu

LANE = 128
SUBLANE = 8


def _round_up(x, m):
    return ((x + m - 1) // m) * m


# ----------------------------- Pallas kernel --------------------------------
def _context_mlp_kernel(ctx_ref, w1_ref, b1_ref, w2_ref, b2_ref, out_ref):
    # hidden = tanh(context @ W1 + b1) — bf16 operands, f32 MXU accumulation.
    ctx = ctx_ref[...].astype(jnp.bfloat16)  # no-op if context already bf16
    h = jnp.dot(ctx, w1_ref[...], preferred_element_type=jnp.float32) + b1_ref[...]
    h = jnp.tanh(h)  # f32 tanh -> EUP (v5e has no bf16 VPU/EUP)
    # params = hidden @ W2 + b2 — unpadded (block_b, P) store.
    out = (
        jnp.dot(h.astype(jnp.bfloat16), w2_ref[...], preferred_element_type=jnp.float32)
        + b2_ref[...]
    )
    out_ref[...] = out.astype(out_ref.dtype)


def _context_fn_dense(context, w1_bf16, b1, w2_bf16, b2):
    """Plain-jnp fallback with the same numerics as the Pallas kernel."""
    ctx = context.astype(jnp.bfloat16)
    h = jnp.tanh(
        jnp.dot(ctx, w1_bf16, preferred_element_type=jnp.float32) + b1
    )
    return (
        jnp.dot(h.astype(jnp.bfloat16), w2_bf16, preferred_element_type=jnp.float32)
        + b2
    )


def context_fn_pallas(
    context,
    w1_bf16,
    b1,
    w2_bf16,
    b2,
    *,
    block_b=None,
    small_batch_threshold=256,
    force_pallas=False,
):
    """Runs the context_fn MLP inside a batch-tiled Pallas kernel.

    context : (B, D_in) float32 or bfloat16
    w1_bf16 : (D_in, H) bfloat16       b1 : (1, H) float32
    w2_bf16 : (H, P)   bfloat16        b2 : (1, P) float32
    returns : (B, P) float32
    """
    B, D_in = context.shape
    H = w1_bf16.shape[1]
    P = w2_bf16.shape[1]

    # Small-batch fallback: pallas_call dispatch / DMA priming dwarfs the compute.
    if (not force_pallas) and B <= small_batch_threshold:
        return _context_fn_dense(context, w1_bf16, b1, w2_bf16, b2)

    # Pad the hidden dim to a lane-dense multiple of 128.  Zero padding keeps the
    # result exact: tanh(0 + 0) = 0 and the corresponding W2 rows are zero.
    H_pad = max(LANE, _round_up(H, LANE))
    if H_pad != H:
        w1_bf16 = jnp.pad(w1_bf16, ((0, 0), (0, H_pad - H)))
        b1 = jnp.pad(b1, ((0, 0), (0, H_pad - H)))
        w2_bf16 = jnp.pad(w2_bf16, ((0, H_pad - H), (0, 0)))

    # Batch tile: aim for >= 2 grid steps (so "parallel" shards across both TCs on
    # v7x) while keeping tiles large (<= 8192 rows) to amortize per-step overhead.
    if block_b is None:
        B_r = _round_up(B, SUBLANE)
        if B_r >= 2 * SUBLANE:
            block_b = min(8192, _round_up(pl.cdiv(B_r, 2), SUBLANE))
        else:
            block_b = B_r
    block_b = max(SUBLANE, _round_up(block_b, SUBLANE))

    B_pad = _round_up(B, block_b)
    if B_pad != B:
        context = jnp.pad(context, ((0, B_pad - B), (0, 0)))

    grid = (B_pad // block_b,)

    ctx_itemsize = jnp.dtype(context.dtype).itemsize
    cost = pl.CostEstimate(
        flops=2 * B_pad * (D_in * H_pad + H_pad * P),
        transcendentals=B_pad * H_pad,
        bytes_accessed=(
            B_pad * D_in * ctx_itemsize   # context in
            + B_pad * P * 4               # params out (f32, unpadded)
            + D_in * H_pad * 2            # W1 (bf16)
            + H_pad * P * 2               # W2 (bf16)
            + (H_pad + P) * 4             # biases (f32)
        ),
    )

    out_padded = pl.pallas_call(
        _context_mlp_kernel,
        out_shape=jax.ShapeDtypeStruct((B_pad, P), jnp.float32),
        grid_spec=pltpu.PrefetchScalarGridSpec(
            num_scalar_prefetch=0,
            grid=grid,
            in_specs=[
                pl.BlockSpec((block_b, D_in), lambda i: (i, 0)),  # streamed per tile
                pl.BlockSpec((D_in, H_pad), lambda i: (0, 0)),    # VMEM-resident
                pl.BlockSpec((1, H_pad), lambda i: (0, 0)),       # VMEM-resident
                pl.BlockSpec((H_pad, P), lambda i: (0, 0)),       # VMEM-resident
                pl.BlockSpec((1, P), lambda i: (0, 0)),           # VMEM-resident
            ],
            out_specs=pl.BlockSpec((block_b, P), lambda i: (i, 0)),
        ),
        compiler_params=pltpu.CompilerParams(
            # Batch tiles are independent -> shard across both TCs on v7x.
            dimension_semantics=("parallel",),
        ),
        cost_estimate=cost,
    )(context, w1_bf16, b1, w2_bf16, b2)

    # Strip batch padding only (no lane padding any more).
    return out_padded[:B]


# ------------------------ Module-equivalent wrapper --------------------------
def affine_transform_factory(params):
    """Builds a univariate affine transform from params (glue, plain JAX).

    params: (B, P) with P >= 2; param 0 -> log_scale, param 1 -> shift.
    Returns transform(x) -> (y, log_det_jacobian), matching the object returned
    by the PyTorch module's forward.
    """
    log_scale = params[:, 0:1]
    shift = params[:, 1:2]

    def transform(x):
        y = x * jnp.exp(log_scale) + shift
        ldj = jnp.broadcast_to(log_scale, x.shape)
        return y, ldj

    return transform


class UnivariateTransformModulePallas:
    """JAX/Pallas equivalent of UnivariateTransformModule.forward."""

    def __init__(self, d_in, hidden, n_params, key):
        k1, k2, k3, k4 = jax.random.split(key, 4)
        # Weights stored in bf16 (halves HBM bytes for the MXU operands);
        # biases kept in f32 (added after the f32-accumulated dot).
        self.w1 = (
            jax.random.normal(k1, (d_in, hidden), jnp.float32) * (1.0 / d_in**0.5)
        ).astype(jnp.bfloat16)
        self.b1 = jax.random.normal(k2, (1, hidden), jnp.float32) * 0.01
        self.w2 = (
            jax.random.normal(k3, (hidden, n_params), jnp.float32) * (1.0 / hidden**0.5)
        ).astype(jnp.bfloat16)
        self.b2 = jax.random.normal(k4, (1, n_params), jnp.float32) * 0.01

    def forward(self, context, **kwargs):
        # params = self.context_fn(context)   -- Pallas hot path (dense fallback
        # for tiny batches where pallas_call dispatch would dominate).
        params = context_fn_pallas(
            context, self.w1, self.b1, self.w2, self.b2, **kwargs
        )
        # transform = self.transform_factory(params) -- plain-Python glue
        transform = affine_transform_factory(params)
        return transform, params  # params returned too so the caller can block on it

    # TODO(synk): forward hooks / `wrappers` have no Pallas equivalent (pure
    # Python callback machinery); they are omitted.


# ---------------------------------- main -------------------------------------
if __name__ == "__main__":
    key = jax.random.PRNGKey(0)
    k_ctx_small, k_ctx_big, k_params, k_x = jax.random.split(key, 4)

    D_IN, HIDDEN, N_PARAMS = 32, 64, 16
    module = UnivariateTransformModulePallas(D_IN, HIDDEN, N_PARAMS, k_params)

    # --- Pallas path (batch large enough to skip the small-batch fallback) ----
    B_PALLAS = 512
    ctx_big = jax.random.normal(k_ctx_big, (B_PALLAS, D_IN), jnp.float32)
    transform_big, params_big = module.forward(ctx_big)
    params_big = jax.block_until_ready(params_big)

    ref_big = _context_fn_dense(ctx_big, module.w1, module.b1, module.w2, module.b2)
    ref_big = jax.block_until_ready(ref_big)
    assert jnp.allclose(params_big, ref_big, atol=1e-2, rtol=1e-2), (
        "Pallas path mismatch vs reference"
    )

    # --- Small-batch fallback path (B=8 -> plain jnp inside the caller) -------
    B_SMALL = 8
    ctx_small = jax.random.normal(k_ctx_small, (B_SMALL, D_IN), jnp.float32)
    transform_small, params_small = module.forward(ctx_small)
    params_small = jax.block_until_ready(params_small)
    ref_small = _context_fn_dense(
        ctx_small, module.w1, module.b1, module.w2, module.b2
    )
    assert jnp.allclose(params_small, ref_small, atol=1e-2, rtol=1e-2), (
        "fallback path mismatch vs reference"
    )

    # Exercise the returned transform once (as a downstream caller would).
    x = jax.random.normal(k_x, (B_PALLAS, 1), jnp.float32)
    y, ldj = transform_big(x)
    jax.block_until_ready(y)
    jax.block_until_ready(ldj)

    print("KERNEL_OK")
</pallas_src>

<mosaic_0001>
module attributes {stable_mosaic.version = 11 : i64} {
  func.func @_context_mlp_kernel(%arg0: i32, %arg1: memref<256x32xf32, #tpu.memory_space<vmem>>, %arg2: memref<32x128xbf16, #tpu.memory_space<vmem>>, %arg3: memref<1x128xf32, #tpu.memory_space<vmem>>, %arg4: memref<128x16xbf16, #tpu.memory_space<vmem>>, %arg5: memref<1x16xf32, #tpu.memory_space<vmem>>, %arg6: memref<256x16xf32, #tpu.memory_space<vmem>>) attributes {dimension_semantics = [#tpu.dimension_semantics<parallel>], iteration_bounds = array<i64: 2>, scalar_prefetch = 0 : i64, scratch_operands = 0 : i64, tpu.core_type = #tpu.core_type<tc>, window_params = [{transform_indices = @transform_0, window_bounds = array<i64: 256, 32>}, {pipeline_mode = #tpu.pipeline_mode<synchronous>, transform_indices = @transform_1, window_bounds = array<i64: 32, 128>}, {pipeline_mode = #tpu.pipeline_mode<synchronous>, transform_indices = @transform_2, window_bounds = array<i64: 1, 128>}, {pipeline_mode = #tpu.pipeline_mode<synchronous>, transform_indices = @transform_3, window_bounds = array<i64: 128, 16>}, {pipeline_mode = #tpu.pipeline_mode<synchronous>, transform_indices = @transform_4, window_bounds = array<i64: 1, 16>}, {transform_indices = @transform_5, window_bounds = array<i64: 256, 16>}]} {
    %c0 = arith.constant 0 : index
    %c0_0 = arith.constant 0 : index
    %0 = vector.load %arg1[%c0, %c0_0] : memref<256x32xf32, #tpu.memory_space<vmem>>, vector<256x32xf32>
    %1 = arith.truncf %0 : vector<256x32xf32> to vector<256x32xbf16>
    %c0_1 = arith.constant 0 : index
    %c0_2 = arith.constant 0 : index
    %2 = vector.load %arg2[%c0_1, %c0_2] : memref<32x128xbf16, #tpu.memory_space<vmem>>, vector<32x128xbf16>
    %cst = arith.constant dense<0.000000e+00> : vector<256x128xf32>
    %3 = tpu.matmul %1, %2, %cst {dimension_numbers = #tpu.dot_dimension_numbers<[1], [0], [0], [1], [0, 0, 1, 1], [], []>} : vector<256x32xbf16>, vector<32x128xbf16>, vector<256x128xf32> -> vector<256x128xf32>
    %c0_3 = arith.constant 0 : index
    %c0_4 = arith.constant 0 : index
    %4 = vector.load %arg3[%c0_3, %c0_4] : memref<1x128xf32, #tpu.memory_space<vmem>>, vector<1x128xf32>
    %5 = vector.broadcast %4 : vector<1x128xf32> to vector<256x128xf32>
    %6 = arith.addf %3, %5 : vector<256x128xf32>
    %7 = math.tanh %6 : vector<256x128xf32>
    %8 = arith.truncf %7 : vector<256x128xf32> to vector<256x128xbf16>
    %c0_5 = arith.constant 0 : index
    %c0_6 = arith.constant 0 : index
    %9 = vector.load %arg4[%c0_5, %c0_6] : memref<128x16xbf16, #tpu.memory_space<vmem>>, vector<128x16xbf16>
    %cst_7 = arith.constant dense<0.000000e+00> : vector<256x16xf32>
    %10 = tpu.matmul %8, %9, %cst_7 {dimension_numbers = #tpu.dot_dimension_numbers<[1], [0], [0], [1], [0, 0, 1, 1], [], []>} : vector<256x128xbf16>, vector<128x16xbf16>, vector<256x16xf32> -> vector<256x16xf32>
    %c0_8 = arith.constant 0 : index
    %c0_9 = arith.constant 0 : index
    %11 = vector.load %arg5[%c0_8, %c0_9] : memref<1x16xf32, #tpu.memory_space<vmem>>, vector<1x16xf32>
    %12 = vector.broadcast %11 : vector<1x16xf32> to vector<256x16xf32>
    %13 = arith.addf %10, %12 : vector<256x16xf32>
    %c0_10 = arith.constant 0 : index
    %c0_11 = arith.constant 0 : index
    %14 = vector.load %arg6[%c0_10, %c0_11] : memref<256x16xf32, #tpu.memory_space<vmem>>, vector<256x16xf32>
    tpu.vector_store %arg6[%c0_10, %c0_11], %13 {strides = array<i32>} : memref<256x16xf32, #tpu.memory_space<vmem>>, vector<256x16xf32>,
    return
  }
  func.func @transform_0(%arg0: i32) -> (i32, i32) {
    %c0_i32 = arith.constant 0 : i32
    %c0_i32_0 = arith.constant 0 : i32
    return %arg0, %c0_i32 : i32, i32
  }
  func.func @transform_1(%arg0: i32) -> (i32, i32) {
    %c0_i32 = arith.constant 0 : i32
    %c0_i32_0 = arith.constant 0 : i32
    %c0_i32_1 = arith.constant 0 : i32
    return %c0_i32, %c0_i32_0 : i32, i32
  }
  func.func @transform_2(%arg0: i32) -> (i32, i32) {
    %c0_i32 = arith.constant 0 : i32
    %c0_i32_0 = arith.constant 0 : i32
    %c0_i32_1 = arith.constant 0 : i32
    return %c0_i32, %c0_i32_0 : i32, i32
  }
  func.func @transform_3(%arg0: i32) -> (i32, i32) {
    %c0_i32 = arith.constant 0 : i32
    %c0_i32_0 = arith.constant 0 : i32
    %c0_i32_1 = arith.constant 0 : i32
    return %c0_i32, %c0_i32_0 : i32, i32
  }
  func.func @transform_4(%arg0: i32) -> (i32, i32) {
    %c0_i32 = arith.constant 0 : i32
    %c0_i32_0 = arith.constant 0 : i32
    %c0_i32_1 = arith.constant 0 : i32
    return %c0_i32, %c0_i32_0 : i32, i32
  }
  func.func @transform_5(%arg0: i32) -> (i32, i32) {
    %c0_i32 = arith.constant 0 : i32
    %c0_i32_0 = arith.constant 0 : i32
    return %arg0, %c0_i32 : i32, i32
  }
}

</mosaic_0001>

<bundles_post_ra>
// kernel: tpu_custom_call.1
= control target key start
LH: loop header
LB: loop body
LE: loop exit
PB: predicated region body
PF: predicated region fallthrough
CT: control target
= control target key end

     0   :  { %s1180_s18 = smov 0   ;;  %s1424_s0 = inlined_call_operand.vmem [shape: f32[512,32], index: 0, kind: input, shape index: {}]   ;;  %s1425_s1 = inlined_call_operand.vmem [shape: bf16[32,128], index: 1, kind: input, shape index: {}]   ;;  %s1426_s2 = inlined_call_operand.vmem [shape: f32[1,128], index: 2, kind: input, shape index: {}]   ;;  %s1427_s3 = inlined_call_operand.vmem [shape: bf16[128,16], index: 3, kind: input, shape index: {}]   ;;  %s1428_s4 = inlined_call_operand.vmem [shape: f32[1,16], index: 4, kind: input, shape index: {}]   ;;  %s1429_s5 = inlined_call_operand.vmem [shape: f32[512,16], index: 5, kind: output, shape index: {}]  }
   0x1 LB: > { %s879_s19 = sadd.s32 4294967295, %s1148_s18   ;;  %p883_p0 = scmp.ge.s32.totalorder %s1148_s18, 1  ;;  %s1148_s18 = sphi %s1180_s18, %s15_s18  }
   0x2   : > { %p188_p1 = scmp.lt.s32.totalorder %s1148_s18, 3 }
   0x4   : > { %p189_p2 = pnand %p883_p0, %p188_p1 }
   0x5   : > { %s884_s22 = sshll.u32 (!%p189_p2), %s879_s19, 5 }
   0x6   : > { %192 = sbr.rel (%p189_p2) target bundleno = 496 (0x1f0), region = 40  ;;  %p217_p3 = scmp.lt.s32.totalorder (!%p189_p2), %s884_s22, 63 }
   0xb   : > { %v1068_v0 = vld [vmem:[%s1425_s1 + $0x8] sm:$0xff]   ;;  %v1069_v1 = vld [vmem:[%s1425_s1] sm:$0xff]   ;;  %v1070_v2 = vld [vmem:[%s1427_s3 + $0x38] sm:$0xff]   ;;  %s1431_s22 = smov (!%p217_p3, %s884_s22), 63  ;;  %vm300_vm0 = vcmask 261120   ;;  %vm790_vm1 = vcmask 130048  }
   0xc   : > { %960 = vmatprep.subr.bf16.mxu0 %v1068_v0  ;;  %v1071_v3 = vld [vmem:[%s1427_s3 + $0x30] sm:$0xff]   ;;  %1044 = vmatprep.subr.bf16.mxu1 %v1070_v2  ;;  %s885_s29 = sshll.u32 %s1431_s22, 3  ;;  %v1072_v52 = vld [vmem:[%s1427_s3 + $0x28] sm:$0xff]   ;;  %v1073_v53 = vld [vmem:[%s1427_s3 + $0x20] sm:$0xff]  }
   0xd   : > { %961 = vmatpush3.bf16.msra.mxu0 %v1068_v0  ;;  %1052 = vmatpush3.bf16.msra.mxu1 %v1070_v2  ;;  %s1208_s7 = scalar_lea.vmem %s1424_s0, %s885_s29  ;;  %v1074_v54 = vld [vmem:[%s1427_s3 + $0x18] sm:$0xff]   ;;  %v1075_v55 = vld [vmem:[%s1427_s3 + $0x10] sm:$0xff]   ;;  %v1076_v56 = vld [vmem:[%s1427_s3 + $0x8] sm:$0xff]   ;;  %s1323_s28 = scalar_lea.vmem %s1429_s5, %s885_s29 }
   0xe   : > { %962 = vmatprep.subr.bf16.mxu0 %v1069_v1  ;;  %1045 = vmatprep.subr.bf16.mxu1 %v1071_v3  ;;  %v229_v4 = vld [vmem:[%s1208_s7] sm:$0xff]  ;;  %v230_v5 = vld [vmem:[%s1208_s7 + $0x8] sm:$0xff]  ;;  %v231_v6 = vld [vmem:[%s1208_s7 + $0x10] sm:$0xff] }
   0xf   : > { %v261_v7 = vpack.c.bf16 %v230_v5, %v229_v4  ;;  %v232_v8 = vld [vmem:[%s1208_s7 + $0x18] sm:$0xff]  ;;  %v233_v9 = vld [vmem:[%s1208_s7 + $0x20] sm:$0xff]  ;;  %v234_v10 = vld [vmem:[%s1208_s7 + $0x28] sm:$0xff] }
  0x10   : > { %v262_v11 = vpack.c.bf16 %v232_v8, %v231_v6  ;;  %v263_v12 = vpack.c.bf16 %v234_v10, %v233_v9  ;;  %v235_v13 = vld [vmem:[%s1208_s7 + $0x30] sm:$0xff]  ;;  %v236_v14 = vld [vmem:[%s1208_s7 + $0x38] sm:$0xff]  ;;  %v237_v15 = vld [vmem:[%s1208_s7 + $0x40] sm:$0xff] }
  0x11   : > { %963 = vmatpush3.bf16.msra.mxu0 %v1069_v1  ;;  %1053 = vmatpush3.bf16.msra.mxu1 %v1071_v3  ;;  %v238_v16 = vld [vmem:[%s1208_s7 + $0x48] sm:$0xff]  ;;  %v264_v17 = vpack.c.bf16 %v236_v14, %v235_v13  ;;  %v239_v19 = vld [vmem:[%s1208_s7 + $0x50] sm:$0xff]  ;;  %v240_v20 = vld [vmem:[%s1208_s7 + $0x58] sm:$0xff] }
  0x12   : > { %996 = vmatprep.subr.bf16.mxu0 %v1070_v2  ;;  %964 = vmatprep.mubr.msk.bf16.mxu0 %vm300_vm0, %v261_v7  ;;  %v265_v18 = vpack.c.bf16 %v238_v16, %v237_v15  ;;  %v241_v21 = vld [vmem:[%s1208_s7 + $0x60] sm:$0xff]  ;;  %v242_v22 = vld [vmem:[%s1208_s7 + $0x68] sm:$0xff]  ;;  %v266_v23 = vpack.c.bf16 %v240_v20, %v239_v19  ;;  %v243_v25 = vld [vmem:[%s1208_s7 + $0x70] sm:$0xff] }
  0x13   : > { %v267_v24 = vpack.c.bf16 %v242_v22, %v241_v21  ;;  %v244_v26 = vld [vmem:[%s1208_s7 + $0x78] sm:$0xff]  ;;  %v245_v27 = vld [vmem:[%s1208_s7 + $0x80] sm:$0xff]  ;;  %v246_v28 = vld [vmem:[%s1208_s7 + $0x88] sm:$0xff]  ;;  %1046 = vmatprep.subr.bf16.mxu1 %v1072_v52 }
  0x14   : > { %965 = vmatmul.mubr.msk.bf16.vlgmr.msra.gmra.mxu0 %vm300_vm0, %v262_v11  ;;  %v268_v29 = vpack.c.bf16 %v244_v26, %v243_v25  ;;  %v269_v30 = vpack.c.bf16 %v246_v28, %v245_v27  ;;  %v247_v31 = vld [vmem:[%s1208_s7 + $0x90] sm:$0xff]  ;;  %v248_v32 = vld [vmem:[%s1208_s7 + $0x98] sm:$0xff]  ;;  %v249_v33 = vld [vmem:[%s1208_s7 + $0xa0] sm:$0xff] }
  0x15   : > { %968 = vmatprep.mubr.msk.bf16.mxu0 %vm300_vm0, %v263_v12  ;;  %997 = vmatpush3.bf16.msra.mxu0 %v1070_v2  ;;  %v250_v34 = vld [vmem:[%s1208_s7 + $0xa8] sm:$0xff]  ;;  %v270_v35 = vpack.c.bf16 %v248_v32, %v247_v31  ;;  %v251_v37 = vld [vmem:[%s1208_s7 + $0xb0] sm:$0xff]  ;;  %v252_v38 = vld [vmem:[%s1208_s7 + $0xb8] sm:$0xff] }
  0x16   : > { %998 = vmatprep.subr.bf16.mxu0 %v1071_v3  ;;  %v271_v36 = vpack.c.bf16 %v250_v34, %v249_v33  ;;  %v253_v39 = vld [vmem:[%s1208_s7 + $0xc0] sm:$0xff]  ;;  %v254_v40 = vld [vmem:[%s1208_s7 + $0xc8] sm:$0xff]  ;;  %v272_v41 = vpack.c.bf16 %v252_v38, %v251_v37  ;;  %v255_v43 = vld [vmem:[%s1208_s7 + $0xd0] sm:$0xff]  ;;  %1054 = vmatpush3.bf16.msra.mxu1 %v1072_v52 }
  0x17   : > { %v273_v42 = vpack.c.bf16 %v254_v40, %v253_v39  ;;  %v256_v44 = vld [vmem:[%s1208_s7 + $0xd8] sm:$0xff]  ;;  %v257_v45 = vld [vmem:[%s1208_s7 + $0xe0] sm:$0xff]  ;;  %v258_v46 = vld [vmem:[%s1208_s7 + $0xe8] sm:$0xff]  ;;  %1047 = vmatprep.subr.bf16.mxu1 %v1073_v53 }
  0x18   : > { %v274_v47 = vpack.c.bf16 %v256_v44, %v255_v43  ;;  %v275_v48 = vpack.c.bf16 %v258_v46, %v257_v45  ;;  %v259_v49 = vld [vmem:[%s1208_s7 + $0xf0] sm:$0xff]  ;;  %v260_v50 = vld [vmem:[%s1208_s7 + $0xf8] sm:$0xff]  ;;  %v1077_v57 = vld [vmem:[%s1427_s3] sm:$0xff]  }
  0x19   : > { %999 = vmatpush3.bf16.msra.mxu0 %v1071_v3  ;;  %v276_v51 = vpack.c.bf16 %v260_v50, %v259_v49  ;;  %v1279_v59 = vld [vmem:[%s1426_s2] ss:$0 sm:$0xff] }
  0x1a   : > { %1000 = vmatprep.subr.bf16.mxu0 %v1072_v52  ;;  %1055 = vmatpush3.bf16.msra.mxu1 %v1073_v53 }
  0x1b   : > { %1048 = vmatprep.subr.bf16.mxu1 %v1074_v54 }
  0x1c   : > { %969 = vmatmul.mubr.msk.bf16.gmra.mxu0 %vm300_vm0, %v264_v17 }
  0x1d   : > { %972 = vmatprep.mubr.msk.bf16.mxu0 %vm300_vm0, %v265_v18  ;;  %1001 = vmatpush3.bf16.msra.mxu0 %v1072_v52 }
  0x1e   : > { %1002 = vmatprep.subr.bf16.mxu0 %v1073_v53  ;;  %1056 = vmatpush3.bf16.msra.mxu1 %v1074_v54 }
  0x1f   : > { %1049 = vmatprep.subr.bf16.mxu1 %v1075_v55 }
  0x21   : > { %1003 = vmatpush3.bf16.msra.mxu0 %v1073_v53 }
  0x22   : > { %1004 = vmatprep.subr.bf16.mxu0 %v1074_v54  ;;  %1057 = vmatpush3.bf16.msra.mxu1 %v1075_v55 }
  0x23   : > { %1050 = vmatprep.subr.bf16.mxu1 %v1076_v56 }
  0x24   : > { %973 = vmatmul.mubr.msk.bf16.gmra.mxu0 %vm300_vm0, %v266_v23 }
  0x25   : > { %976 = vmatprep.mubr.msk.bf16.mxu0 %vm300_vm0, %v267_v24  ;;  %1005 = vmatpush3.bf16.msra.mxu0 %v1074_v54 }
  0x26   : > { %1006 = vmatprep.subr.bf16.mxu0 %v1075_v55  ;;  %1058 = vmatpush3.bf16.msra.mxu1 %v1076_v56 }
  0x27   : > { %1051 = vmatprep.subr.bf16.mxu1 %v1077_v57 }
  0x29   : > { %1007 = vmatpush3.bf16.msra.mxu0 %v1075_v55 }
  0x2a   : > { %1008 = vmatprep.subr.bf16.mxu0 %v1076_v56  ;;  %1059 = vmatpush3.bf16.msra.mxu1 %v1077_v57 }
  0x2c   : > { %977 = vmatmul.mubr.msk.bf16.gmra.mxu0 %vm300_vm0, %v268_v29 }
  0x2d   : > { %980 = vmatprep.mubr.msk.bf16.mxu0 %vm300_vm0, %v269_v30  ;;  %1009 = vmatpush3.bf16.msra.mxu0 %v1076_v56 }
  0x2e   : > { %1010 = vmatprep.subr.bf16.mxu0 %v1077_v57 }
  0x31   : > { %1011 = vmatpush3.bf16.msra.mxu0 %v1077_v57 }
  0x34   : > { %981 = vmatmul.mubr.msk.bf16.gmra.mxu0 %vm300_vm0, %v270_v35 }
  0x35   : > { %984 = vmatprep.mubr.msk.bf16.mxu0 %vm300_vm0, %v271_v36 }
  0x3c   : > { %985 = vmatmul.mubr.msk.bf16.gmra.mxu0 %vm300_vm0, %v272_v41 }
  0x3d   : > { %988 = vmatprep.mubr.msk.bf16.mxu0 %vm300_vm0, %v273_v42 }
  0x44   : > { %989 = vmatmul.mubr.msk.bf16.gmra.mxu0 %vm300_vm0, %v274_v47 }
  0x45   : > { %992 = vmatprep.mubr.msk.bf16.mxu0 %vm300_vm0, %v275_v48 }
  0x4c   : > { %993 = vmatmul.mubr.msk.bf16.gmra.mxu0 %vm300_vm0, %v276_v51 }
  0xd4   : > { %v966_v58 = vpop.f32.mrf.mxu0 }
  0xd5   : > { %v392_v0 = vadd.f32 %v966_v58, %v1279_v59 }
  0xd6   : > { %v383_v60 = vpop.f32.mrf.mxu0 }
  0xd7   : > { %v384_v61 = vadd.f32 %v1279_v59, %v383_v60 }
  0xd8   : > { %v967_v62 = vpop.f32.mrf.mxu0 }
  0xd9   : > { %v395_v63 = vadd.f32 %v967_v62, %v1279_v59  ;;  %1078 = vtanh.f32 %v384_v61 }
  0xda   : > { %v386_v1 = vpop.f32.mrf.mxu0 }
  0xdb   : > { %v387_v2 = vadd.f32 %v1279_v59, %v386_v1  ;;  %1080 = vtanh.f32 %v395_v63 }
  0xdc   : > { %v970_v3 = vpop.f32.mrf.mxu0 }
  0xdd   : > { %1082 = vtanh.f32 %v387_v2  ;;  %v408_v8 = vadd.f32 %v970_v3, %v1279_v59 }
  0xde   : > { %1084 = vtanh.f32 %v392_v0  ;;  %v399_v4 = vpop.f32.mrf.mxu0 }
  0xdf   : > { %v400_v5 = vadd.f32 %v1279_v59, %v399_v4 }
  0xe0   : > { %v971_v6 = vpop.f32.mrf.mxu0 }
  0xe1   : > { %v411_v7 = vadd.f32 %v971_v6, %v1279_v59  ;;  %1086 = vtanh.f32 %v400_v5 }
  0xe2   : > { %v402_v9 = vpop.f32.mrf.mxu0 }
  0xe3   : > { %v403_v10 = vadd.f32 %v1279_v59, %v402_v9  ;;  %1088 = vtanh.f32 %v411_v7 }
  0xe4   : > { %v974_v11 = vpop.f32.mrf.mxu0 }
  0xe5   : > { %1090 = vtanh.f32 %v403_v10  ;;  %v424_v19 = vadd.f32 %v974_v11, %v1279_v59 }
  0xe6   : > { %1092 = vtanh.f32 %v408_v8  ;;  %v415_v12 = vpop.f32.mrf.mxu0  ;;  %v1079_v14 = vpop.eup %1078 }
  0xe7   : > { %v416_v13 = vadd.f32 %v1279_v59, %v415_v12 }
  0xe8   : > { %v975_v15 = vpop.f32.mrf.mxu0  ;;  %v1081_v16 = vpop.eup %1080 }
  0xe9   : > { %v427_v17 = vadd.f32 %v975_v15, %v1279_v59  ;;  %1094 = vtanh.f32 %v416_v13 }
  0xea   : > { %v1083_v18 = vpop.eup %1082  ;;  %v418_v20 = vpop.f32.mrf.mxu0 }
  0xeb   : > { %v1085_v21 = vpop.eup %1084  ;;  %v419_v22 = vadd.f32 %v1279_v59, %v418_v20  ;;  %v542_v23 = vpack.c.bf16 %v1083_v18, %v1079_v14  ;;  %1096 = vtanh.f32 %v427_v17 }
  0xec   : > { %v978_v24 = vpop.f32.mrf.mxu0  ;;  %v543_v25 = vpack.c.bf16 %v1081_v16, %v1085_v21 }
  0xed   : > { %1098 = vtanh.f32 %v419_v22  ;;  %1012 = vmatprep.mubr.bf16.mxu0 %v542_v23  ;;  %v440_v33 = vadd.f32 %v978_v24, %v1279_v59 }
  0xee   : > { %1100 = vtanh.f32 %v424_v19  ;;  %v431_v26 = vpop.f32.mrf.mxu0  ;;  %1013 = vmatmul.mubr.bf16.vlgmr.msra.gmra.mxu0 %v543_v25  ;;  %v1087_v28 = vpop.eup %1086 }
  0xef   : > { %v432_v27 = vadd.f32 %v1279_v59, %v431_v26 }
  0xf0   : > { %v979_v29 = vpop.f32.mrf.mxu0  ;;  %v1089_v30 = vpop.eup %1088 }
  0xf1   : > { %v443_v31 = vadd.f32 %v979_v29, %v1279_v59  ;;  %1102 = vtanh.f32 %v432_v27 }
  0xf2   : > { %v1091_v32 = vpop.eup %1090  ;;  %v434_v34 = vpop.f32.mrf.mxu0 }
  0xf3   : > { %v1093_v35 = vpop.eup %1092  ;;  %v435_v36 = vadd.f32 %v1279_v59, %v434_v34  ;;  %v544_v37 = vpack.c.bf16 %v1091_v32, %v1087_v28  ;;  %1104 = vtanh.f32 %v443_v31 }
  0xf4   : > { %v982_v38 = vpop.f32.mrf.mxu0  ;;  %v545_v39 = vpack.c.bf16 %v1089_v30, %v1093_v35 }
  0xf5   : > { %1106 = vtanh.f32 %v435_v36  ;;  %1016 = vmatprep.mubr.bf16.mxu1 %v544_v37  ;;  %v456_v47 = vadd.f32 %v982_v38, %v1279_v59 }
  0xf6   : > { %1108 = vtanh.f32 %v440_v33  ;;  %v447_v40 = vpop.f32.mrf.mxu0  ;;  %1017 = vmatmul.mubr.bf16.vlgmr.msra.gmra.mxu1 %v545_v39  ;;  %v1095_v42 = vpop.eup %1094 }
  0xf7   : > { %v448_v41 = vadd.f32 %v1279_v59, %v447_v40 }
  0xf8   : > { %v983_v43 = vpop.f32.mrf.mxu0  ;;  %v1097_v44 = vpop.eup %1096 }
  0xf9   : > { %v459_v45 = vadd.f32 %v983_v43, %v1279_v59  ;;  %1110 = vtanh.f32 %v448_v41  ;;  %v1316_v43 = vld [vmem:[%s1428_s4] ss:$0 sm:$0xff] }
  0xfa   : > { %v1099_v46 = vpop.eup %1098  ;;  %v450_v48 = vpop.f32.mrf.mxu0 }
  0xfb   : > { %v1101_v49 = vpop.eup %1100  ;;  %v451_v50 = vadd.f32 %v1279_v59, %v450_v48  ;;  %v546_v51 = vpack.c.bf16 %v1099_v46, %v1095_v42  ;;  %1112 = vtanh.f32 %v459_v45 }
  0xfc   : > { %v986_v52 = vpop.f32.mrf.mxu0  ;;  %v547_v53 = vpack.c.bf16 %v1097_v44, %v1101_v49 }
  0xfd   : > { %1114 = vtanh.f32 %v451_v50  ;;  %1020 = vmatprep.mubr.bf16.mxu1 %v546_v51  ;;  %v472_v62 = vadd.f32 %v986_v52, %v1279_v59 }
  0xfe   : > { %1116 = vtanh.f32 %v456_v47  ;;  %v463_v54 = vpop.f32.mrf.mxu0  ;;  %1021 = vmatmul.mubr.bf16.gmra.mxu1 %v547_v53  ;;  %v1103_v56 = vpop.eup %1102 }
  0xff   : > { %v464_v55 = vadd.f32 %v1279_v59, %v463_v54 }
 0x100   : > { %v987_v57 = vpop.f32.mrf.mxu0  ;;  %v1105_v58 = vpop.eup %1104 }
 0x101   : > { %v475_v60 = vadd.f32 %v987_v57, %v1279_v59  ;;  %1118 = vtanh.f32 %v464_v55 }
 0x102   : > { %v1107_v61 = vpop.eup %1106  ;;  %v466_v63 = vpop.f32.mrf.mxu0 }
 0x103   : > { %v1109_v0 = vpop.eup %1108  ;;  %v467_v1 = vadd.f32 %v1279_v59, %v466_v63  ;;  %v548_v2 = vpack.c.bf16 %v1107_v61, %v1103_v56  ;;  %1120 = vtanh.f32 %v475_v60 }
 0x104   : > { %v990_v3 = vpop.f32.mrf.mxu0  ;;  %v549_v4 = vpack.c.bf16 %v1105_v58, %v1109_v0 }
 0x105   : > { %1122 = vtanh.f32 %v467_v1  ;;  %1024 = vmatprep.mubr.bf16.mxu1 %v548_v2  ;;  %v488_v12 = vadd.f32 %v990_v3, %v1279_v59 }
 0x106   : > { %1124 = vtanh.f32 %v472_v62  ;;  %v479_v5 = vpop.f32.mrf.mxu0  ;;  %1025 = vmatmul.mubr.bf16.gmra.mxu1 %v549_v4  ;;  %v1111_v7 = vpop.eup %1110 }
 0x107   : > { %v480_v6 = vadd.f32 %v1279_v59, %v479_v5 }
 0x108   : > { %v991_v8 = vpop.f32.mrf.mxu0  ;;  %v1113_v9 = vpop.eup %1112 }
 0x109   : > { %v491_v10 = vadd.f32 %v991_v8, %v1279_v59  ;;  %1126 = vtanh.f32 %v480_v6 }
 0x10a   : > { %v1115_v11 = vpop.eup %1114  ;;  %v482_v13 = vpop.f32.mrf.mxu0 }
 0x10b   : > { %v1117_v14 = vpop.eup %1116  ;;  %v483_v15 = vadd.f32 %v1279_v59, %v482_v13  ;;  %v550_v16 = vpack.c.bf16 %v1115_v11, %v1111_v7  ;;  %1128 = vtanh.f32 %v491_v10 }
 0x10c   : > { %v994_v17 = vpop.f32.mrf.mxu0  ;;  %v551_v18 = vpack.c.bf16 %v1113_v9, %v1117_v14 }
 0x10d   : > { %1130 = vtanh.f32 %v483_v15  ;;  %1028 = vmatprep.mubr.bf16.mxu1 %v550_v16  ;;  %v504_v26 = vadd.f32 %v994_v17, %v1279_v59 }
 0x10e   : > { %1132 = vtanh.f32 %v488_v12  ;;  %v495_v19 = vpop.f32.mrf.mxu0  ;;  %1029 = vmatmul.mubr.bf16.gmra.mxu1 %v551_v18  ;;  %v1119_v21 = vpop.eup %1118 }
 0x10f   : > { %v496_v20 = vadd.f32 %v1279_v59, %v495_v19 }
 0x110   : > { %v995_v22 = vpop.f32.mrf.mxu0  ;;  %v1121_v23 = vpop.eup %1120 }
 0x111   : > { %v507_v24 = vadd.f32 %v995_v22, %v1279_v59  ;;  %1134 = vtanh.f32 %v496_v20 }
 0x112   : > { %v1123_v25 = vpop.eup %1122  ;;  %v498_v27 = vpop.f32.mrf.mxu0 }
 0x113   : > { %v1125_v28 = vpop.eup %1124  ;;  %v499_v29 = vadd.f32 %v1279_v59, %v498_v27  ;;  %v552_v30 = vpack.c.bf16 %v1123_v25, %v1119_v21  ;;  %1136 = vtanh.f32 %v507_v24 }
 0x114   : > { %v553_v31 = vpack.c.bf16 %v1121_v23, %v1125_v28 }
 0x115   : > { %1138 = vtanh.f32 %v499_v29  ;;  %1032 = vmatprep.mubr.bf16.mxu1 %v552_v30 }
 0x116   : > { %1140 = vtanh.f32 %v504_v26  ;;  %1033 = vmatmul.mubr.bf16.gmra.mxu1 %v553_v31  ;;  %v1127_v32 = vpop.eup %1126 }
 0x118   : > { %v1129_v33 = vpop.eup %1128 }
 0x11a   : > { %v1131_v34 = vpop.eup %1130 }
 0x11b   : > { %v1133_v35 = vpop.eup %1132  ;;  %v554_v36 = vpack.c.bf16 %v1131_v34, %v1127_v32 }
 0x11c   : > { %v555_v37 = vpack.c.bf16 %v1129_v33, %v1133_v35 }
 0x11d   : > { %1036 = vmatprep.mubr.bf16.mxu1 %v554_v36 }
 0x11e   : > { %1037 = vmatmul.mubr.bf16.gmra.mxu1 %v555_v37  ;;  %v1135_v38 = vpop.eup %1134 }
 0x120   : > { %v1137_v39 = vpop.eup %1136 }
 0x122   : > { %v1139_v40 = vpop.eup %1138 }
 0x123   : > { %v1141_v59 = vpop.eup %1140  ;;  %v556_v41 = vpack.c.bf16 %v1139_v40, %v1135_v38 }
 0x124   : > { %v557_v42 = vpack.c.bf16 %v1137_v39, %v1141_v59 }
 0x125   : > { %1040 = vmatprep.mubr.bf16.mxu1 %v556_v41 }
 0x126   : > { %1041 = vmatmul.mubr.bf16.gmra.mxu1 %v557_v42 }
 0x1ae   : > { %v1014_v44 = vpop.f32.mrf.mxu0 }
 0x1af   : > { %v672_v45 = vadd.f32 %v1014_v44, %v1316_v43 }
 0x1b0   : > { %v663_v46 = vpop.f32.mrf.mxu0 }
 0x1b1   : > { %793 = vst.msk [vmem:[%s1323_s28 + $0x10] sm:$0xff] %vm790_vm1, %v672_v45  ;;  %v664_v47 = vadd.f32 %v1316_v43, %v663_v46 }
 0x1b2   : > { %v1015_v48 = vpop.f32.mrf.mxu0 }
 0x1b3   : > { %791 = vst.msk [vmem:[%s1323_s28] sm:$0xff] %vm790_vm1, %v664_v47  ;;  %v675_v49 = vadd.f32 %v1015_v48, %v1316_v43 }
 0x1b4   : > { %v666_v50 = vpop.f32.mrf.mxu0 }
 0x1b5   : > { %794 = vst.msk [vmem:[%s1323_s28 + $0x18] sm:$0xff] %vm790_vm1, %v675_v49  ;;  %v667_v51 = vadd.f32 %v1316_v43, %v666_v50 }
 0x1b6   : > { %v1018_v52 = vpop.f32.mrf.mxu1 }
 0x1b7   : > { %792 = vst.msk [vmem:[%s1323_s28 + $0x8] sm:$0xff] %vm790_vm1, %v667_v51  ;;  %v688_v53 = vadd.f32 %v1018_v52, %v1316_v43 }
 0x1b8   : > { %v679_v54 = vpop.f32.mrf.mxu1 }
 0x1b9   : > { %797 = vst.msk [vmem:[%s1323_s28 + $0x30] sm:$0xff] %vm790_vm1, %v688_v53  ;;  %v680_v55 = vadd.f32 %v1316_v43, %v679_v54 }
 0x1ba   : > { %v1019_v56 = vpop.f32.mrf.mxu1 }
 0x1bb   : > { %795 = vst.msk [vmem:[%s1323_s28 + $0x20] sm:$0xff] %vm790_vm1, %v680_v55  ;;  %v691_v57 = vadd.f32 %v1019_v56, %v1316_v43 }
 0x1bc   : > { %v682_v58 = vpop.f32.mrf.mxu1 }
 0x1bd   : > { %798 = vst.msk [vmem:[%s1323_s28 + $0x38] sm:$0xff] %vm790_vm1, %v691_v57  ;;  %v683_v60 = vadd.f32 %v1316_v43, %v682_v58 }
 0x1be   : > { %v1022_v61 = vpop.f32.mrf.mxu1 }
 0x1bf   : > { %796 = vst.msk [vmem:[%s1323_s28 + $0x28] sm:$0xff] %vm790_vm1, %v683_v60  ;;  %v704_v62 = vadd.f32 %v1022_v61, %v1316_v43 }
 0x1c0   : > { %v695_v63 = vpop.f32.mrf.mxu1 }
 0x1c1   : > { %801 = vst.msk [vmem:[%s1323_s28 + $0x50] sm:$0xff] %vm790_vm1, %v704_v62  ;;  %v696_v0 = vadd.f32 %v1316_v43, %v695_v63 }
 0x1c2   : > { %v1023_v1 = vpop.f32.mrf.mxu1 }
 0x1c3   : > { %799 = vst.msk [vmem:[%s1323_s28 + $0x40] sm:$0xff] %vm790_vm1, %v696_v0  ;;  %v707_v2 = vadd.f32 %v1023_v1, %v1316_v43 }
 0x1c4   : > { %v698_v3 = vpop.f32.mrf.mxu1 }
 0x1c5   : > { %802 = vst.msk [vmem:[%s1323_s28 + $0x58] sm:$0xff] %vm790_vm1, %v707_v2  ;;  %v699_v4 = vadd.f32 %v1316_v43, %v698_v3 }
 0x1c6   : > { %v1026_v5 = vpop.f32.mrf.mxu1 }
 0x1c7   : > { %800 = vst.msk [vmem:[%s1323_s28 + $0x48] sm:$0xff] %vm790_vm1, %v699_v4  ;;  %v720_v6 = vadd.f32 %v1026_v5, %v1316_v43 }
 0x1c8   : > { %v711_v7 = vpop.f32.mrf.mxu1 }
 0x1c9   : > { %805 = vst.msk [vmem:[%s1323_s28 + $0x70] sm:$0xff] %vm790_vm1, %v720_v6  ;;  %v712_v8 = vadd.f32 %v1316_v43, %v711_v7 }
 0x1ca   : > { %v1027_v9 = vpop.f32.mrf.mxu1 }
 0x1cb   : > { %803 = vst.msk [vmem:[%s1323_s28 + $0x60] sm:$0xff] %vm790_vm1, %v712_v8  ;;  %v723_v10 = vadd.f32 %v1027_v9, %v1316_v43 }
 0x1cc   : > { %v714_v11 = vpop.f32.mrf.mxu1 }
 0x1cd   : > { %806 = vst.msk [vmem:[%s1323_s28 + $0x78] sm:$0xff] %vm790_vm1, %v723_v10  ;;  %v715_v12 = vadd.f32 %v1316_v43, %v714_v11 }
 0x1ce   : > { %v1030_v13 = vpop.f32.mrf.mxu1 }
 0x1cf   : > { %804 = vst.msk [vmem:[%s1323_s28 + $0x68] sm:$0xff] %vm790_vm1, %v715_v12  ;;  %v736_v14 = vadd.f32 %v1030_v13, %v1316_v43 }
 0x1d0   : > { %v727_v15 = vpop.f32.mrf.mxu1 }
 0x1d1   : > { %809 = vst.msk [vmem:[%s1323_s28 + $0x90] sm:$0xff] %vm790_vm1, %v736_v14  ;;  %v728_v16 = vadd.f32 %v1316_v43, %v727_v15 }
 0x1d2   : > { %v1031_v17 = vpop.f32.mrf.mxu1 }
 0x1d3   : > { %807 = vst.msk [vmem:[%s1323_s28 + $0x80] sm:$0xff] %vm790_vm1, %v728_v16  ;;  %v739_v18 = vadd.f32 %v1031_v17, %v1316_v43 }
 0x1d4   : > { %v730_v19 = vpop.f32.mrf.mxu1 }
 0x1d5   : > { %810 = vst.msk [vmem:[%s1323_s28 + $0x98] sm:$0xff] %vm790_vm1, %v739_v18  ;;  %v731_v20 = vadd.f32 %v1316_v43, %v730_v19 }
 0x1d6   : > { %v1034_v21 = vpop.f32.mrf.mxu1 }
 0x1d7   : > { %808 = vst.msk [vmem:[%s1323_s28 + $0x88] sm:$0xff] %vm790_vm1, %v731_v20  ;;  %v752_v22 = vadd.f32 %v1034_v21, %v1316_v43 }
 0x1d8   : > { %v743_v23 = vpop.f32.mrf.mxu1 }
 0x1d9   : > { %813 = vst.msk [vmem:[%s1323_s28 + $0xb0] sm:$0xff] %vm790_vm1, %v752_v22  ;;  %v744_v24 = vadd.f32 %v1316_v43, %v743_v23 }
 0x1da   : > { %v1035_v25 = vpop.f32.mrf.mxu1 }
 0x1db   : > { %811 = vst.msk [vmem:[%s1323_s28 + $0xa0] sm:$0xff] %vm790_vm1, %v744_v24  ;;  %v755_v26 = vadd.f32 %v1035_v25, %v1316_v43 }
 0x1dc   : > { %v746_v27 = vpop.f32.mrf.mxu1 }
 0x1dd   : > { %814 = vst.msk [vmem:[%s1323_s28 + $0xb8] sm:$0xff] %vm790_vm1, %v755_v26  ;;  %v747_v28 = vadd.f32 %v1316_v43, %v746_v27 }
 0x1de   : > { %v1038_v29 = vpop.f32.mrf.mxu1 }
 0x1df   : > { %812 = vst.msk [vmem:[%s1323_s28 + $0xa8] sm:$0xff] %vm790_vm1, %v747_v28  ;;  %v768_v30 = vadd.f32 %v1038_v29, %v1316_v43 }
 0x1e0   : > { %v759_v31 = vpop.f32.mrf.mxu1 }
 0x1e1   : > { %817 = vst.msk [vmem:[%s1323_s28 + $0xd0] sm:$0xff] %vm790_vm1, %v768_v30  ;;  %v760_v32 = vadd.f32 %v1316_v43, %v759_v31 }
 0x1e2   : > { %v1039_v33 = vpop.f32.mrf.mxu1 }
 0x1e3   : > { %815 = vst.msk [vmem:[%s1323_s28 + $0xc0] sm:$0xff] %vm790_vm1, %v760_v32  ;;  %v771_v34 = vadd.f32 %v1039_v33, %v1316_v43 }
 0x1e4   : > { %v762_v35 = vpop.f32.mrf.mxu1 }
 0x1e5   : > { %818 = vst.msk [vmem:[%s1323_s28 + $0xd8] sm:$0xff] %vm790_vm1, %v771_v34  ;;  %v763_v36 = vadd.f32 %v1316_v43, %v762_v35 }
 0x1e6   : > { %v1042_v37 = vpop.f32.mrf.mxu1 }
 0x1e7   : > { %816 = vst.msk [vmem:[%s1323_s28 + $0xc8] sm:$0xff] %vm790_vm1, %v763_v36  ;;  %v784_v38 = vadd.f32 %v1042_v37, %v1316_v43 }
 0x1e8   : > { %v775_v39 = vpop.f32.mrf.mxu1 }
 0x1e9   : > { %821 = vst.msk [vmem:[%s1323_s28 + $0xf0] sm:$0xff] %vm790_vm1, %v784_v38  ;;  %v776_v40 = vadd.f32 %v1316_v43, %v775_v39 }
 0x1ea   : > { %v1043_v59 = vpop.f32.mrf.mxu1 }
 0x1eb   : > { %819 = vst.msk [vmem:[%s1323_s28 + $0xe0] sm:$0xff] %vm790_vm1, %v776_v40  ;;  %v787_v41 = vadd.f32 %v1043_v59, %v1316_v43 }
 0x1ec   : > { %v778_v42 = vpop.f32.mrf.mxu1 }
 0x1ed   : > { %822 = vst.msk [vmem:[%s1323_s28 + $0xf8] sm:$0xff] %vm790_vm1, %v787_v41  ;;  %v779_v44 = vadd.f32 %v1316_v43, %v778_v42 }
 0x1ef   : > { %820 = vst.msk [vmem:[%s1323_s28 + $0xe8] sm:$0xff] %vm790_vm1, %v779_v44 }
 0x1f0 PF: > { %s15_s18 = sadd.s32 1, %s1148_s18  }
 0x1f1   : > { %p12_p4 = scmp.ge.s32.totalorder %s15_s18, 4  }
 0x1f3   :  { %14 = sbr.rel (!%p12_p4) target bundleno = 1 (0x1), region = 70 }

</bundles_post_ra>
